<compile_context>
chip_gen: v7x
topology: tpu7x:2x2x1
jax: 0.10.0
libtpu: 0.0.40
codegen_flags: <defaults>
</compile_context>

<pallas_src>
import jax
import jax.numpy as jnp
from jax.experimental import pallas as pl
from jax.experimental.pallas import tpu as pltpu

# ----------------------- model hyper-params (small, deterministic) -----------------------
N_NODES = 16      # number of graph nodes
INPUT_DIM = 4
HIDDEN_DIM = 32   # self.inp == hidden_dim (emb is present)
OUTPUT_DIM = 8


def _round8(n):
    return ((n + 7) // 8) * 8


# ------------------------- packed parameter slab layout (row offsets) --------------------
F = HIDDEN_DIM
OUT = OUTPUT_DIM
OFF_W2 = 0                               # (INPUT_DIM, 3F)  W2   = emb_w @ Wcg   (step-0 path)
OFF_WCG = _round8(INPUT_DIM)             # (F, 3F)          Wcg  = [wz@lz_t | wr@lr_t | wh@lh_t]
OFF_ZRBOT = OFF_WCG + F                  # (F, 2F)          [lz_bot | lr_bot]
OFF_LHBOT = OFF_ZRBOT + F                # (F, F)           lh_bot
OFF_ROW = OFF_LHBOT + F                  # (F, OUT)         readout weight
OFF_BIAS = OFF_ROW + F                   # 8 bias rows: b_h / bias_cg / ro_b
SLAB_ROWS = _round8(OFF_BIAS + 8)        # 144
SLAB_COLS = 128                          # lane-aligned slab width

# ----------------------------- packed data slab layout (rows) ----------------------------
DATA_X = 0                               # rows [0:N),   lanes [0:INPUT_DIM)  : x
DATA_A = N_NODES                         # rows [N:2N),  lanes [0:N)          : A_hat
DATA_H = 2 * N_NODES                     # rows [2N:3N), lanes [0:F)          : prev_h
DATA_ROWS = 3 * N_NODES                  # 48


# --------------------------------------- kernel ------------------------------------------
def _a3tgcn_kernel(data_ref, w_ref, out_ref, h_sc, up_sc):
    f32 = jnp.float32
    t = pl.program_id(0)
    last = pl.num_programs(0) - 1

    a_hat = data_ref[DATA_A:DATA_A + N_NODES, 0:N_NODES]                # (N, N)

    # ---- conv-input projection through the composed gate-top weights -----------------
    @pl.when(t == 0)
    def _():
        # initialize the hidden-state carry and run the fully composed
        # (emb -> conv-weight -> gate-top) prefix straight from x
        h_sc[...] = data_ref[DATA_H:DATA_H + N_NODES, 0:F]
        x = data_ref[DATA_X:DATA_X + N_NODES, 0:INPUT_DIM]              # (N, INPUT_DIM)
        w2 = w_ref[OFF_W2:OFF_W2 + INPUT_DIM, :]                        # (INPUT_DIM, 128)
        up_sc[...] = (jnp.dot(x, w2, preferred_element_type=f32)
                      + w_ref[OFF_BIAS + 0:OFF_BIAS + 1, :])            # x@W2 + emb_b@Wcg

    @pl.when(t > 0)
    def _():
        # later rollout steps feed tanh(prev h_state) through the conv/gate-top path
        u = jnp.tanh(h_sc[...])                                         # (N, F)
        wcg = w_ref[OFF_WCG:OFF_WCG + F, :]                             # (F, 128)
        up_sc[...] = jnp.dot(u, wcg, preferred_element_type=f32)

    H = h_sc[...]                                                       # (N, F)

    # ---- GRU gates --------------------------------------------------------------------
    g_top = (jnp.dot(a_hat, up_sc[...], preferred_element_type=f32)
             + w_ref[OFF_BIAS + 1:OFF_BIAS + 2, :])                     # (N, 128), lanes 0:3F
    zr_bot = jnp.dot(H, w_ref[OFF_ZRBOT:OFF_ZRBOT + F, :],
                     preferred_element_type=f32)                        # (N, 128), lanes 0:2F

    z = jax.nn.sigmoid(g_top[:, 0:F] + zr_bot[:, 0:F])
    r = jax.nn.sigmoid(g_top[:, F:2 * F] + zr_bot[:, F:2 * F])
    hb = jnp.dot(H * r, w_ref[OFF_LHBOT:OFF_LHBOT + F, :],
                 preferred_element_type=f32)[:, 0:F]
    h_tilde = jnp.tanh(g_top[:, 2 * F:3 * F] + hb)

    # GRU-style state; A3TGCN attention with periods=1 is softmax([a]) == 1.0
    h_state = z * H + (1.0 - z) * h_tilde
    h_sc[...] = h_state                                                 # carry for next step

    # ---- finalize: readout + single lane-dense output store on last step ---------------
    @pl.when(t == last)
    def _():
        h_out = jnp.tanh(h_state)
        y = (jnp.dot(h_out, w_ref[OFF_ROW:OFF_ROW + F, :],
                     preferred_element_type=f32)
             + w_ref[OFF_BIAS + 2:OFF_BIAS + 3, :])[:, 0:OUT]
        pad = jnp.zeros((N_NODES, SLAB_COLS - F - OUT), f32)
        out_ref[...] = jnp.concatenate([h_state, y, pad], axis=1)       # one full-width store


def a3tgcn_forward(x, a_hat, prev_h, slab, delta_t=1):
    """x: (N, INPUT_DIM), a_hat: (N, N), prev_h: (N, F), slab: packed params. -> (y, h_state).

    delta_t steps of the GRU cell are fused into a single pallas_call with grid=(delta_t,);
    delta_t=1 matches the module's iterate=False forward.
    """
    N = x.shape[0]
    data = jnp.zeros((DATA_ROWS, SLAB_COLS), jnp.float32)
    data = data.at[DATA_X:DATA_X + N, 0:x.shape[1]].set(x)
    data = data.at[DATA_A:DATA_A + N, 0:N].set(a_hat)
    data = data.at[DATA_H:DATA_H + N, 0:prev_h.shape[1]].set(prev_h)

    packed = pl.pallas_call(
        _a3tgcn_kernel,
        out_shape=jax.ShapeDtypeStruct((N, SLAB_COLS), jnp.float32),
        grid_spec=pltpu.PrefetchScalarGridSpec(
            num_scalar_prefetch=0,
            grid=(delta_t,),
            in_specs=[
                pl.BlockSpec((DATA_ROWS, SLAB_COLS), lambda t: (0, 0)),  # data: DMA'd once
                pl.BlockSpec((SLAB_ROWS, SLAB_COLS), lambda t: (0, 0)),  # weights: DMA'd once
            ],
            out_specs=pl.BlockSpec((N, SLAB_COLS), lambda t: (0, 0)),    # resident output
            scratch_shapes=[
                pltpu.VMEM((N, F), jnp.float32),          # hidden-state carry across steps
                pltpu.VMEM((N, SLAB_COLS), jnp.float32),  # gate-top pre-A_hat projection
            ],
        ),
        compiler_params=pltpu.CompilerParams(
            dimension_semantics=("arbitrary",)),          # serial GRU recurrence
    )(data, slab)
    h_state = packed[:, 0:F]
    y = packed[:, F:F + OUT]
    return y, h_state


# ----------------------------- glue: graph normalization ---------------------------------
def gcn_norm_dense(edge_index, num_nodes):
    """Dense D^{-1/2}(A+I)D^{-1/2} matching PyG GCNConv(add_self_loops=True)."""
    src, dst = edge_index
    adj = jnp.zeros((num_nodes, num_nodes), jnp.float32)
    adj = adj.at[dst, src].add(1.0)              # message flows src -> dst
    adj = adj + jnp.eye(num_nodes, dtype=jnp.float32)
    deg = adj.sum(axis=1)
    d_inv_sqrt = jnp.where(deg > 0, 1.0 / jnp.sqrt(deg), 0.0)
    return adj * d_inv_sqrt[:, None] * d_inv_sqrt[None, :]


# --------------------------------- parameter handling ------------------------------------
def init_params(key, input_dim, f, out_dim):
    """Deterministic parameter init. Weights stored pre-transposed as (in, out)."""
    keys = jax.random.split(key, 16)
    u = lambda k, shape, fan_in: jax.random.uniform(
        k, shape, jnp.float32, -1.0 / jnp.sqrt(fan_in), 1.0 / jnp.sqrt(fan_in))
    p = {}
    p["emb_w"] = u(keys[0], (input_dim, f), input_dim)
    p["emb_b"] = u(keys[1], (1, f), input_dim)
    # GCNConv weights (in=f, out=f) + bias
    p["wz"], p["bz"] = u(keys[2], (f, f), f), u(keys[3], (1, f), f)
    p["wr"], p["br"] = u(keys[4], (f, f), f), u(keys[5], (1, f), f)
    p["wh"], p["bh"] = u(keys[6], (f, f), f), u(keys[7], (1, f), f)
    # gate linears Linear(2f -> f)
    p["lz_w"], p["lz_b"] = u(keys[8], (2 * f, f), 2 * f), u(keys[9], (1, f), 2 * f)
    p["lr_w"], p["lr_b"] = u(keys[10], (2 * f, f), 2 * f), u(keys[11], (1, f), 2 * f)
    p["lh_w"], p["lh_b"] = u(keys[12], (2 * f, f), 2 * f), u(keys[13], (1, f), 2 * f)
    # readout Linear(f -> out_dim)
    p["ro_w"], p["ro_b"] = u(keys[14], (f, out_dim), f), u(keys[15], (1, out_dim), f)
    return p


def pack_params(p, input_dim, f, out_dim):
    """Pack + offline-compose all 16 parameter tensors into one (SLAB_ROWS, SLAB_COLS) slab.

    Composition (exact; only fp association changes):
      Wcg     = [wz @ lz_top | wr @ lr_top | wh @ lh_top]            (f, 3f)
      W2      = emb_w @ Wcg                                          (input_dim, 3f)
      b_h     = emb_b @ Wcg                                          (1, 3f)
      bias_cg = [bz@lz_top + lz_b | br@lr_top + lr_b | bh@lh_top + lh_b]
    so that g_top = A_hat @ (x @ W2 + b_h) + bias_cg  (first step), and
            g_top = A_hat @ (tanh(H_prev) @ Wcg) + bias_cg  (later rollout steps).
    Padding lanes/rows MUST stay zero (kernel loads weights at full 128-lane width).
    """
    lz_top, lr_top, lh_top = p["lz_w"][:f], p["lr_w"][:f], p["lh_w"][:f]
    lz_bot, lr_bot, lh_bot = p["lz_w"][f:], p["lr_w"][f:], p["lh_w"][f:]

    wcg = jnp.concatenate([p["wz"] @ lz_top, p["wr"] @ lr_top, p["wh"] @ lh_top], axis=1)
    w2 = p["emb_w"] @ wcg                                                     # (input_dim, 3f)
    b_h = p["emb_b"] @ wcg                                                    # (1, 3f)
    bias_cg = jnp.concatenate([p["bz"] @ lz_top + p["lz_b"],
                               p["br"] @ lr_top + p["lr_b"],
                               p["bh"] @ lh_top + p["lh_b"]], axis=1)         # (1, 3f)
    w_zrbot = jnp.concatenate([lz_bot, lr_bot], axis=1)                       # (f, 2f)

    slab = jnp.zeros((SLAB_ROWS, SLAB_COLS), jnp.float32)
    slab = slab.at[OFF_W2:OFF_W2 + input_dim, 0:3 * f].set(w2)
    slab = slab.at[OFF_WCG:OFF_WCG + f, 0:3 * f].set(wcg)
    slab = slab.at[OFF_ZRBOT:OFF_ZRBOT + f, 0:2 * f].set(w_zrbot)
    slab = slab.at[OFF_LHBOT:OFF_LHBOT + f, 0:f].set(lh_bot)
    slab = slab.at[OFF_ROW:OFF_ROW + f, 0:out_dim].set(p["ro_w"])
    slab = slab.at[OFF_BIAS + 0, 0:3 * f].set(b_h[0])
    slab = slab.at[OFF_BIAS + 1, 0:3 * f].set(bias_cg[0])
    slab = slab.at[OFF_BIAS + 2, 0:out_dim].set(p["ro_b"][0])
    return slab


def reference_forward(x, a_hat, prev_h, p, delta_t=1):
    """Plain-JAX reference mirroring the PyTorch forward, for correctness check."""
    h = x @ p["emb_w"] + p["emb_b"]
    h_state = prev_h
    for _ in range(delta_t):
        cz = a_hat @ (h @ p["wz"]) + p["bz"]
        cr = a_hat @ (h @ p["wr"]) + p["br"]
        ch = a_hat @ (h @ p["wh"]) + p["bh"]
        z = jax.nn.sigmoid(jnp.concatenate([cz, prev_h], axis=1) @ p["lz_w"] + p["lz_b"])
        r = jax.nn.sigmoid(jnp.concatenate([cr, prev_h], axis=1) @ p["lr_w"] + p["lr_b"])
        ht = jnp.tanh(jnp.concatenate([ch, prev_h * r], axis=1) @ p["lh_w"] + p["lh_b"])
        h_state = z * prev_h + (1.0 - z) * ht
        h = jnp.tanh(h_state)
        prev_h = h_state
    y = h @ p["ro_w"] + p["ro_b"]
    return y, h_state


if __name__ == "__main__":
    key = jax.random.PRNGKey(0)
    k_x, k_p = jax.random.split(key)

    # node features
    x = jax.random.normal(k_x, (N_NODES, INPUT_DIM), jnp.float32)

    # deterministic ring graph, bidirectional edges -> edge_index (2, 2N)
    idx = jnp.arange(N_NODES)
    src = jnp.concatenate([idx, (idx + 1) % N_NODES])
    dst = jnp.concatenate([(idx + 1) % N_NODES, idx])
    edge_index = jnp.stack([src, dst], axis=0)

    a_hat = gcn_norm_dense(edge_index, N_NODES)

    # prev_h is None in the module -> TGCN initializes hidden state to zeros
    prev_h = jnp.zeros((N_NODES, HIDDEN_DIM), jnp.float32)

    params = init_params(k_p, INPUT_DIM, HIDDEN_DIM, OUTPUT_DIM)
    slab = pack_params(params, INPUT_DIM, HIDDEN_DIM, OUTPUT_DIM)

    # --- iterate=False semantics (delta_t forced to 1), the module's default forward ---
    y, h_state = a3tgcn_forward(x, a_hat, prev_h, slab, delta_t=1)
    jax.block_until_ready((y, h_state))
    y_ref, h_ref = reference_forward(x, a_hat, prev_h, params, delta_t=1)
    assert y.shape == (N_NODES, OUTPUT_DIM) and h_state.shape == (N_NODES, HIDDEN_DIM)
    assert jnp.allclose(y, y_ref, atol=1e-4), "y mismatch vs reference (delta_t=1)"
    assert jnp.allclose(h_state, h_ref, atol=1e-4), "h_state mismatch vs reference (delta_t=1)"

    # --- iterate=True rollout: delta_t steps fused inside ONE pallas_call (grid=(T,)) ---
    T = 3
    y_t, h_t = a3tgcn_forward(x, a_hat, prev_h, slab, delta_t=T)
    jax.block_until_ready((y_t, h_t))
    y_tref, h_tref = reference_forward(x, a_hat, prev_h, params, delta_t=T)
    assert jnp.allclose(y_t, y_tref, atol=1e-4), "y mismatch vs reference (delta_t=3)"
    assert jnp.allclose(h_t, h_tref, atol=1e-4), "h_state mismatch vs reference (delta_t=3)"

    print("KERNEL_OK")
</pallas_src>

<mosaic_0001>
module attributes {stable_mosaic.version = 11 : i64} {
  func.func @_a3tgcn_kernel(%arg0: i32, %arg1: memref<48x128xf32, #tpu.memory_space<vmem>>, %arg2: memref<144x128xf32, #tpu.memory_space<vmem>>, %arg3: memref<16x128xf32, #tpu.memory_space<vmem>>, %arg4: memref<16x32xf32, #tpu.memory_space<vmem>>, %arg5: memref<16x128xf32, #tpu.memory_space<vmem>>) attributes {dimension_semantics = [#tpu.dimension_semantics<arbitrary>], iteration_bounds = array<i64: 1>, scalar_prefetch = 0 : i64, scratch_operands = 2 : i64, tpu.core_type = #tpu.core_type<tc>, window_params = [{pipeline_mode = #tpu.pipeline_mode<synchronous>, transform_indices = @transform_0, window_bounds = array<i64: 48, 128>}, {pipeline_mode = #tpu.pipeline_mode<synchronous>, transform_indices = @transform_1, window_bounds = array<i64: 144, 128>}, {pipeline_mode = #tpu.pipeline_mode<synchronous>, transform_indices = @transform_2, window_bounds = array<i64: 16, 128>}]} {
    %c16 = arith.constant 16 : index
    %c0 = arith.constant 0 : index
    %0 = vector.load %arg1[%c16, %c0] : memref<48x128xf32, #tpu.memory_space<vmem>>, vector<16x16xf32>
    %c0_i32 = arith.constant 0 : i32
    %1 = arith.cmpi eq, %arg0, %c0_i32 : i32
    %2 = arith.extui %1 : i1 to i32
    %c0_i32_0 = arith.constant 0 : i32
    %3 = arith.cmpi ne, %2, %c0_i32_0 : i32
    scf.if %3 {
      %c32 = arith.constant 32 : index
      %c0_19 = arith.constant 0 : index
      %47 = vector.load %arg1[%c32, %c0_19] : memref<48x128xf32, #tpu.memory_space<vmem>>, vector<16x32xf32>
      %c0_20 = arith.constant 0 : index
      %c0_21 = arith.constant 0 : index
      %48 = vector.load %arg4[%c0_20, %c0_21] : memref<16x32xf32, #tpu.memory_space<vmem>>, vector<16x32xf32>
      tpu.vector_store %arg4[%c0_20, %c0_21], %47 {strides = array<i32>} : memref<16x32xf32, #tpu.memory_space<vmem>>, vector<16x32xf32>,
      %c0_22 = arith.constant 0 : index
      %c0_23 = arith.constant 0 : index
      %49 = vector.load %arg1[%c0_22, %c0_23] : memref<48x128xf32, #tpu.memory_space<vmem>>, vector<16x4xf32>
      %c0_24 = arith.constant 0 : index
      %c0_25 = arith.constant 0 : index
      %50 = vector.load %arg2[%c0_24, %c0_25] : memref<144x128xf32, #tpu.memory_space<vmem>>, vector<4x128xf32>
      %cst_26 = arith.constant dense<0.000000e+00> : vector<16x128xf32>
      %51 = tpu.matmul %49, %50, %cst_26 {dimension_numbers = #tpu.dot_dimension_numbers<[1], [0], [0], [1], [0, 0, 1, 1], [], []>} : vector<16x4xf32>, vector<4x128xf32>, vector<16x128xf32> -> vector<16x128xf32>
      %c136 = arith.constant 136 : index
      %c0_27 = arith.constant 0 : index
      %52 = vector.load %arg2[%c136, %c0_27] : memref<144x128xf32, #tpu.memory_space<vmem>>, vector<1x128xf32>
      %53 = vector.broadcast %52 : vector<1x128xf32> to vector<16x128xf32>
      %54 = arith.addf %51, %53 : vector<16x128xf32>
      %c0_28 = arith.constant 0 : index
      %c0_29 = arith.constant 0 : index
      %55 = vector.load %arg5[%c0_28, %c0_29] : memref<16x128xf32, #tpu.memory_space<vmem>>, vector<16x128xf32>
      tpu.vector_store %arg5[%c0_28, %c0_29], %54 {strides = array<i32>} : memref<16x128xf32, #tpu.memory_space<vmem>>, vector<16x128xf32>,
    } else {
    }
    %c0_i32_1 = arith.constant 0 : i32
    %4 = arith.cmpi sgt, %arg0, %c0_i32_1 : i32
    %5 = arith.extui %4 : i1 to i32
    %c0_i32_2 = arith.constant 0 : i32
    %6 = arith.cmpi ne, %5, %c0_i32_2 : i32
    scf.if %6 {
      %c0_19 = arith.constant 0 : index
      %c0_20 = arith.constant 0 : index
      %47 = vector.load %arg4[%c0_19, %c0_20] : memref<16x32xf32, #tpu.memory_space<vmem>>, vector<16x32xf32>
      %48 = math.tanh %47 : vector<16x32xf32>
      %c8 = arith.constant 8 : index
      %c0_21 = arith.constant 0 : index
      %49 = vector.load %arg2[%c8, %c0_21] : memref<144x128xf32, #tpu.memory_space<vmem>>, vector<32x128xf32>
      %cst_22 = arith.constant dense<0.000000e+00> : vector<16x128xf32>
      %50 = tpu.matmul %48, %49, %cst_22 {dimension_numbers = #tpu.dot_dimension_numbers<[1], [0], [0], [1], [0, 0, 1, 1], [], []>} : vector<16x32xf32>, vector<32x128xf32>, vector<16x128xf32> -> vector<16x128xf32>
      %c0_23 = arith.constant 0 : index
      %c0_24 = arith.constant 0 : index
      %51 = vector.load %arg5[%c0_23, %c0_24] : memref<16x128xf32, #tpu.memory_space<vmem>>, vector<16x128xf32>
      tpu.vector_store %arg5[%c0_23, %c0_24], %50 {strides = array<i32>} : memref<16x128xf32, #tpu.memory_space<vmem>>, vector<16x128xf32>,
    } else {
    }
    %c0_3 = arith.constant 0 : index
    %c0_4 = arith.constant 0 : index
    %7 = vector.load %arg4[%c0_3, %c0_4] : memref<16x32xf32, #tpu.memory_space<vmem>>, vector<16x32xf32>
    %c0_5 = arith.constant 0 : index
    %c0_6 = arith.constant 0 : index
    %8 = vector.load %arg5[%c0_5, %c0_6] : memref<16x128xf32, #tpu.memory_space<vmem>>, vector<16x128xf32>
    %cst = arith.constant dense<0.000000e+00> : vector<16x128xf32>
    %9 = tpu.matmul %0, %8, %cst {dimension_numbers = #tpu.dot_dimension_numbers<[1], [0], [0], [1], [0, 0, 1, 1], [], []>} : vector<16x16xf32>, vector<16x128xf32>, vector<16x128xf32> -> vector<16x128xf32>
    %c137 = arith.constant 137 : index
    %c0_7 = arith.constant 0 : index
    %10 = vector.load %arg2[%c137, %c0_7] : memref<144x128xf32, #tpu.memory_space<vmem>>, vector<1x128xf32>
    %11 = vector.broadcast %10 : vector<1x128xf32> to vector<16x128xf32>
    %12 = arith.addf %9, %11 : vector<16x128xf32>
    %c40 = arith.constant 40 : index
    %c0_8 = arith.constant 0 : index
    %13 = vector.load %arg2[%c40, %c0_8] : memref<144x128xf32, #tpu.memory_space<vmem>>, vector<32x128xf32>
    %cst_9 = arith.constant dense<0.000000e+00> : vector<16x128xf32>
    %14 = tpu.matmul %7, %13, %cst_9 {dimension_numbers = #tpu.dot_dimension_numbers<[1], [0], [0], [1], [0, 0, 1, 1], [], []>} : vector<16x32xf32>, vector<32x128xf32>, vector<16x128xf32> -> vector<16x128xf32>
    %15 = vector.extract_strided_slice %12 {offsets = [0, 0], sizes = [16, 32], strides = [1, 1]} : vector<16x128xf32> to vector<16x32xf32>
    %16 = vector.extract_strided_slice %14 {offsets = [0, 0], sizes = [16, 32], strides = [1, 1]} : vector<16x128xf32> to vector<16x32xf32>
    %17 = arith.addf %15, %16 : vector<16x32xf32>
    %18 = arith.negf %17 : vector<16x32xf32>
    %19 = math.exp %18 : vector<16x32xf32>
    %cst_10 = arith.constant 1.000000e+00 : f32
    %20 = vector.broadcast %cst_10 : f32 to vector<16x32xf32>
    %21 = arith.addf %20, %19 : vector<16x32xf32>
    %22 = arith.divf %20, %21 : vector<16x32xf32>
    %23 = vector.extract_strided_slice %12 {offsets = [0, 32], sizes = [16, 32], strides = [1, 1]} : vector<16x128xf32> to vector<16x32xf32>
    %24 = vector.extract_strided_slice %14 {offsets = [0, 32], sizes = [16, 32], strides = [1, 1]} : vector<16x128xf32> to vector<16x32xf32>
    %25 = arith.addf %23, %24 : vector<16x32xf32>
    %26 = arith.negf %25 : vector<16x32xf32>
    %27 = math.exp %26 : vector<16x32xf32>
    %cst_11 = arith.constant 1.000000e+00 : f32
    %28 = vector.broadcast %cst_11 : f32 to vector<16x32xf32>
    %29 = arith.addf %28, %27 : vector<16x32xf32>
    %30 = arith.divf %28, %29 : vector<16x32xf32>
    %31 = arith.mulf %7, %30 : vector<16x32xf32>
    %c72 = arith.constant 72 : index
    %c0_12 = arith.constant 0 : index
    %32 = vector.load %arg2[%c72, %c0_12] : memref<144x128xf32, #tpu.memory_space<vmem>>, vector<32x128xf32>
    %cst_13 = arith.constant dense<0.000000e+00> : vector<16x128xf32>
    %33 = tpu.matmul %31, %32, %cst_13 {dimension_numbers = #tpu.dot_dimension_numbers<[1], [0], [0], [1], [0, 0, 1, 1], [], []>} : vector<16x32xf32>, vector<32x128xf32>, vector<16x128xf32> -> vector<16x128xf32>
    %34 = vector.extract_strided_slice %33 {offsets = [0, 0], sizes = [16, 32], strides = [1, 1]} : vector<16x128xf32> to vector<16x32xf32>
    %35 = vector.extract_strided_slice %12 {offsets = [0, 64], sizes = [16, 32], strides = [1, 1]} : vector<16x128xf32> to vector<16x32xf32>
    %36 = arith.addf %35, %34 : vector<16x32xf32>
    %37 = math.tanh %36 : vector<16x32xf32>
    %38 = arith.mulf %22, %7 : vector<16x32xf32>
    %cst_14 = arith.constant 1.000000e+00 : f32
    %39 = vector.broadcast %cst_14 : f32 to vector<16x32xf32>
    %40 = arith.subf %39, %22 : vector<16x32xf32>
    %41 = arith.mulf %40, %37 : vector<16x32xf32>
    %42 = arith.addf %38, %41 : vector<16x32xf32>
    %c0_15 = arith.constant 0 : index
    %c0_16 = arith.constant 0 : index
    %43 = vector.load %arg4[%c0_15, %c0_16] : memref<16x32xf32, #tpu.memory_space<vmem>>, vector<16x32xf32>
    tpu.vector_store %arg4[%c0_15, %c0_16], %42 {strides = array<i32>} : memref<16x32xf32, #tpu.memory_space<vmem>>, vector<16x32xf32>,
    %c0_i32_17 = arith.constant 0 : i32
    %44 = arith.cmpi eq, %arg0, %c0_i32_17 : i32
    %45 = arith.extui %44 : i1 to i32
    %c0_i32_18 = arith.constant 0 : i32
    %46 = arith.cmpi ne, %45, %c0_i32_18 : i32
    scf.if %46 {
      %47 = math.tanh %42 : vector<16x32xf32>
      %c104 = arith.constant 104 : index
      %c0_19 = arith.constant 0 : index
      %48 = vector.load %arg2[%c104, %c0_19] : memref<144x128xf32, #tpu.memory_space<vmem>>, vector<32x128xf32>
      %cst_20 = arith.constant dense<0.000000e+00> : vector<16x128xf32>
      %49 = tpu.matmul %47, %48, %cst_20 {dimension_numbers = #tpu.dot_dimension_numbers<[1], [0], [0], [1], [0, 0, 1, 1], [], []>} : vector<16x32xf32>, vector<32x128xf32>, vector<16x128xf32> -> vector<16x128xf32>
      %c138 = arith.constant 138 : index
      %c0_21 = arith.constant 0 : index
      %50 = vector.load %arg2[%c138, %c0_21] : memref<144x128xf32, #tpu.memory_space<vmem>>, vector<1x128xf32>
      %51 = vector.broadcast %50 : vector<1x128xf32> to vector<16x128xf32>
      %52 = arith.addf %49, %51 : vector<16x128xf32>
      %53 = vector.extract_strided_slice %52 {offsets = [0, 0], sizes = [16, 8], strides = [1, 1]} : vector<16x128xf32> to vector<16x8xf32>
      %cst_22 = arith.constant 0.000000e+00 : f32
      %54 = vector.broadcast %cst_22 : f32 to vector<16x88xf32>
      %55 = tpu.concatenate %42, %53, %54 in 1 : vector<16x32xf32>, vector<16x8xf32>, vector<16x88xf32> -> vector<16x128xf32>
      %c0_23 = arith.constant 0 : index
      %c0_24 = arith.constant 0 : index
      %56 = vector.load %arg3[%c0_23, %c0_24] : memref<16x128xf32, #tpu.memory_space<vmem>>, vector<16x128xf32>
      tpu.vector_store %arg3[%c0_23, %c0_24], %55 {strides = array<i32>} : memref<16x128xf32, #tpu.memory_space<vmem>>, vector<16x128xf32>,
    } else {
    }
    return
  }
  func.func @transform_0(%arg0: i32) -> (i32, i32) {
    %c0_i32 = arith.constant 0 : i32
    %c0_i32_0 = arith.constant 0 : i32
    %c0_i32_1 = arith.constant 0 : i32
    return %c0_i32, %c0_i32_0 : i32, i32
  }
  func.func @transform_1(%arg0: i32) -> (i32, i32) {
    %c0_i32 = arith.constant 0 : i32
    %c0_i32_0 = arith.constant 0 : i32
    %c0_i32_1 = arith.constant 0 : i32
    return %c0_i32, %c0_i32_0 : i32, i32
  }
  func.func @transform_2(%arg0: i32) -> (i32, i32) {
    %c0_i32 = arith.constant 0 : i32
    %c0_i32_0 = arith.constant 0 : i32
    %c0_i32_1 = arith.constant 0 : i32
    return %c0_i32, %c0_i32_0 : i32, i32
  }
}

</mosaic_0001>

<bundles_post_ra>
// kernel: tpu_custom_call.1
= control target key start
LH: loop header
LB: loop body
LE: loop exit
PB: predicated region body
PF: predicated region fallthrough
CT: control target
= control target key end

     0   :  { %7 = vsyncpa [#allocation5], 0  ;;  %s991_s0 = inlined_call_operand.hbm [shape: f32[48,128], index: 0, kind: input, shape index: {}]   ;;  %s992_s1 = inlined_call_operand.hbm [shape: f32[144,128], index: 1, kind: input, shape index: {}]   ;;  %s993_s2 = inlined_call_operand.hbm [shape: f32[16,128], index: 2, kind: output, shape index: {}]  }
   0x1   :  { %8 = vsyncpa [#allocation8], 0 }
   0x2   :  { %9 = vsyncpa [#allocation6], 0  ;;  %s899_s9 = smov [#allocation4]   ;;  %s827_s13 = scalar_lea.hbm %s991_s0, 768 }
   0x3   :  { %s15_s10 = sshll.u32 %s899_s9, 4  ;;  %p828_p0 = scmp.ne.s32.totalorder %s991_s0, %s827_s13  ;;  %s16_s10 = int_to_ptr.vmem [resolvable:$true] %s15_s10 }
   0x4   :  { %p831_p1 = scmp.lt.u32.totalorder %s827_s13, %s991_s0 }
   0x6   :  { %p833_p2 = pnand %p831_p1, %p828_p0 }
   0x8   :  { %836 = shalt.err (!%p833_p2)
}
   0x9   :  { %s837_s18 = scalar_lea.vmem %s16_s10, 768  ;;  %p842_p4 = scmp.lt.s32.totalorder %s16_s10, %s16_s10 }
   0xa   :  { %p838_p3 = scmp.ne.s32.totalorder %s16_s10, %s837_s18  ;;  %p843_p5 = scmp.lt.s32.totalorder %s837_s18, %s837_s18 }
   0xc   :  { %p844_p6 = por %p843_p5, %p842_p4 }
   0xe   :  { %p845_p7 = pnand %p844_p6, %p838_p3 }
  0x10   :  { %848 = shalt.err (!%p845_p7)
}
  0x11   :  { %s900_s19 = smov 128   ;;  %s901_s20 = smov 8  }
  0x12   :  { %21 = dma.hbm_to_vmem [thread:$0]  %s991_s0, 768, %s16_s10, [#allocation5], %s900_s19, %s900_s19, %s901_s20  }
  0x13   :  { %s902_s23 = smov [#allocation7]   ;;  %s849_s27 = scalar_lea.hbm %s992_s1, 2304 }
  0x14   :  { %s27_s24 = sshll.u32 %s902_s23, 4  ;;  %p850_p8 = scmp.ne.s32.totalorder %s992_s1, %s849_s27  ;;  %s28_s24 = int_to_ptr.vmem [resolvable:$true] %s27_s24 }
  0x15   :  { %p853_p9 = scmp.lt.u32.totalorder %s849_s27, %s992_s1 }
  0x17   :  { %p855_p10 = pnand %p853_p9, %p850_p8 }
  0x19   :  { %858 = shalt.err (!%p855_p10)
}
  0x1a   :  { %s859_s4 = scalar_lea.vmem %s28_s24, 2304  ;;  %p864_p12 = scmp.lt.s32.totalorder %s28_s24, %s28_s24 }
  0x1b   :  { %p860_p11 = scmp.ne.s32.totalorder %s28_s24, %s859_s4  ;;  %p865_p13 = scmp.lt.s32.totalorder %s859_s4, %s859_s4 }
  0x1d   :  { %p866_p0 = por %p865_p13, %p864_p12 }
  0x1f   :  { %p867_p1 = pnand %p866_p0, %p860_p11 }
  0x21   :  { %870 = shalt.err (!%p867_p1)
}
  0x22   :  { %33 = dma.hbm_to_vmem [thread:$0]  %s992_s1, 2304, %s28_s24, [#allocation8], %s900_s19, %s900_s19, %s901_s20  }
  0x23   :  { %893 = dma.done.wait [#allocation5], 768  }
  0x24   :  { %894 = vsyncadd [#allocation5], 4294966528 }
  0x25   :  { %895 = dma.done.wait [#allocation8], 2304  }
  0x26   :  { %896 = vsyncadd [#allocation8], 4294964992  ;;  %vm66_vm0 = vcmask 1043456   ;;  %vm59_vm1 = vcmask 31744   ;;  %v53_v0 = vld [vmem:[#allocation7] sm:$0xf] }
  0x27   :  { %v51_v1 = vld [vmem:[#allocation4] sm:$0xff]  ;;  %v52_v2 = vld [vmem:[#allocation4 + $0x8] sm:$0xff]  ;;  %730 = vmatprep.subr.msk.mxu1 %vm66_vm0, %v53_v0  ;;  %v334_v3 = vld [vmem:[#allocation7 + $0x28] sm:$0xff]  ;;  %vm48_vm2 = vcmask 261120   ;;  %vm252_vm3 = vcmask 130048   ;;  %s903_s1 = smov 96  }
  0x28   :  { %732 = vmatprep.mubr.msk.f32.mxu1 %vm59_vm1, %v51_v1  ;;  %731 = vmatpush3.msk.msra.mxu1 %vm66_vm0, %v53_v0  ;;  %v335_v4 = vld [vmem:[#allocation7 + $0x30] sm:$0xff]  ;;  %v47_v7 = vld [vmem:[#allocation4 + $0x28] sm:$0xff]  ;;  %v337_v9 = vld [vmem:[#allocation7 + $0x40] sm:$0xff]  ;;  %s904_s6 = smov 64   ;;  %s905_s7 = smov 32   ;;  %vm664_vm4 = vcmask 326656  }
  0x29   :  { %733 = vmatmul.mubr.msk.f32.vlgmr.msra.gmra.mrb[0].mxu1 %vm59_vm1, %v52_v2  ;;  %v779_v5 = vpack.c.bf16 %v335_v4, %v334_v3  ;;  %v46_v6 = vld [vmem:[#allocation4 + $0x20] sm:$0xff]  ;;  %50 = vst.msk [vmem:[#allocation2 + $0x8] sm:$0xff] %vm48_vm2, %v47_v7  ;;  %v336_v8 = vld [vmem:[#allocation7 + $0x38] sm:$0xff]  ;;  %v40_v11 = vld [vmem:[#allocation4 + $0x10] sm:$0xff]  ;;  %s906_s8 = smov [#allocation9]  }
  0x2a   :  { %49 = vst.msk [vmem:[#allocation2] sm:$0xff] %vm48_vm2, %v46_v6  ;;  %v783_v10 = vpack.c.bf16 %v337_v9, %v336_v8  ;;  %739 = vmatprep.mubr.msk.f32.mxu1 %vm252_vm3, %v40_v11  ;;  %v687_v14 = vld [vmem:[#allocation7 + $0x88] ss:$0 sm:$0xff]  ;;  %v445_v24 = vld [vmem:[#allocation7 + $0x50] sm:$0xff]  ;;  %v693_v26 = vld [vmem:[#allocation7 + $0x89] ss:$0 sm:$0xff] }
  0x2b   :  { %780 = vmatprep.subr.bf16.mxu0 %v779_v5  ;;  %v41_v20 = vld [vmem:[#allocation4 + $0x18] sm:$0xff]  ;;  %v446_v37 = vld [vmem:[#allocation7 + $0x58] sm:$0xff]  ;;  %v447_v38 = vld [vmem:[#allocation7 + $0x60] sm:$0xff]  ;;  %s674_s9 = sshll.u32 %s906_s8, 4  ;;  %s675_s9 = int_to_ptr.vmem [resolvable:$true] %s674_s9 }
  0x2c   :  { %782 = vmatpush3.bf16.msra.mxu0 %v779_v5  ;;  %v444_v23 = vld [vmem:[#allocation7 + $0x48] sm:$0xff]  ;;  %v791_v40 = vpack.c.bf16 %v447_v38, %v446_v37  ;;  %v565_v55 = vld [vmem:[#allocation7 + $0x70] sm:$0xff]  ;;  %v566_v56 = vld [vmem:[#allocation7 + $0x78] sm:$0xff]  ;;  %s871_s10 = scalar_lea.vmem %s675_s9, 256  ;;  %p876_p3 = scmp.lt.s32.totalorder %s675_s9, %s675_s9 }
  0x2d   :  { %784 = vmatprep.subr.bf16.mxu0 %v783_v10  ;;  %v787_v25 = vpack.c.bf16 %v445_v24, %v444_v23  ;;  %v564_v54 = vld [vmem:[#allocation7 + $0x68] sm:$0xff]  ;;  %v567_v58 = vld [vmem:[#allocation7 + $0x80] sm:$0xff]  ;;  %p872_p2 = scmp.ne.s32.totalorder %s675_s9, %s871_s10  ;;  %p877_p4 = scmp.lt.s32.totalorder %s871_s10, %s871_s10 }
  0x2e   :  { %v795_v57 = vpack.c.bf16 %v565_v55, %v564_v54  ;;  %v799_v59 = vpack.c.bf16 %v567_v58, %v566_v56 }
  0x2f   :  { %p878_p5 = por %p877_p4, %p876_p3 }
  0x30   :  { %786 = vmatpush3.bf16.msra.mxu0 %v783_v10  ;;  %v959_v13 = vld [vmem:[#allocation2 + $0x8] sm:$0xff] }
  0x31   :  { %v955_v12 = vld [vmem:[#allocation2] sm:$0xff]  ;;  %796 = vmatprep.subr.bf16.mxu0 %v795_v57  ;;  %v702_v10 = vld [vmem:[#allocation7 + $0x8a] ss:$0 sm:$0xff]  ;;  %p879_p6 = pnand %p878_p5, %p872_p2 }
  0x32   :  { %750 = vmatprep.mubr.msk.f32.mxu0 %vm48_vm2, %v955_v12 }
  0x33   :  { %751 = vmatmul.mubr.msk.f32.vlgmr.msra.gmra.mrb[0].mxu0 %vm48_vm2, %v959_v13 }
  0x34   :  { %798 = vmatpush3.bf16.msra.mxu0 %v795_v57 }
  0x35   :  { %800 = vmatprep.subr.bf16.mxu0 %v799_v59 }
  0x38   :  { %802 = vmatpush3.bf16.msra.mxu0 %v799_v59 }
  0xfc   :  { %v734_v15 = vpop.f32.mrb[0].mxu1 }
  0xfd   :  { %v142_v16 = vadd.f32 %v734_v15, %v687_v14  ;;  %v136_v17 = vpop.f32.mrb[1].mxu1 }
  0xfe   :  { %v137_v18 = vadd.f32 %v687_v14, %v136_v17 }
 0x100   :  { %v775_v19 = vpack.c.bf16 %v142_v16, %v137_v18 }
 0x102   :  { %776 = vmatprep.subr.bf16.mxu1 %v775_v19 }
 0x103   :  { %778 = vmatpush3.bf16.msra.mxu1 %v775_v19 }
 0x104   :  { %788 = vmatprep.subr.bf16.mxu1 %v787_v25 }
 0x106   :  { %740 = vmatmul.mubr.msk.f32.vlgmr.msra.gmra.mrb[2].mxu1 %vm252_vm3, %v41_v20  ;;  %v752_v21 = vpop.f32.mrb[0].mxu0 }
 0x107   :  { %v411_v22 = vpop.f32.mrb[1].mxu0  ;;  %790 = vmatpush3.bf16.msra.mxu1 %v787_v25 }
 0x108   :  { %792 = vmatprep.subr.bf16.mxu1 %v791_v40 }
 0x10b   :  { %794 = vmatpush3.bf16.msra.mxu1 %v791_v40 }
 0x1d9   :  { %v741_v27 = vpop.f32.mrb[2].mxu1 }
 0x1da   :  { %v331_v28 = vadd.f32 %v741_v27, %v693_v26  ;;  %v325_v29 = vpop.f32.mrb[3].mxu1 }
 0x1db   :  { %v326_v30 = vadd.f32 %v693_v26, %v325_v29 }
 0x1dc   :  { %v421_v31 = vadd.f32 %v752_v21, %v331_v28 }
 0x1dd   :  { %v420_v32 = vadd.f32 %v411_v22, %v326_v30 }
 0x1de   :  { %v699_v33 = vmul.f32 -1.442695, %v421_v31 }
 0x1df   :  { %v698_v34 = vmul.f32 -1.442695, %v420_v32 }
 0x1e0   :  { %811 = vpow2.f32 %v699_v33 }
 0x1e1   :  { %813 = vpow2.f32 %v698_v34 }
 0x1ea   :  { %v812_v35 = vpop.eup %811 }
 0x1eb   :  { %v814_v36 = vpop.eup %813  ;;  %v429_v41 = vadd.f32 1.0, %v812_v35 }
 0x1ec   :  { %v428_v39 = vadd.f32 1.0, %v814_v36 }
 0x1ee   :  { %815 = vrcp.f32 %v428_v39 }
 0x1ef   :  { %817 = vrcp.f32 %v429_v41 }
 0x1f8   :  { %v816_v42 = vpop.eup %815 }
 0x1f9   :  { %436 = vrot.lane.b32.xlu0 %v816_v42, %s903_s1  ;;  %v818_v43 = vpop.eup %817  ;;  %v543_v62 = vsub.f32 1.0, %v816_v42  ;;  %v541_v0 = vmul.f32 %v816_v42, %v955_v12 }
 0x1fa   :  { %v544_v3 = vsub.f32 1.0, %v818_v43  ;;  %v542_v5 = vmul.f32 %v818_v43, %v959_v13 }
 0x1fd   :  { %438 = vrot.lane.b32.xlu0 %v818_v43, %s903_s1 }
 0x26b   :  { %v437_v44 = vpop.permute.xlu0 %436 }
 0x26c   :  { %v442_v45 = vmul.f32 %v437_v44, %v955_v12 }
 0x26e   :  { %761 = vmatprep.mubr.msk.f32.mxu1 %vm48_vm2, %v442_v45 }
 0x26f   :  { %v439_v46 = vpop.permute.xlu0 %438 }
 0x270   :  { %v443_v47 = vmul.f32 %v439_v46, %v959_v13 }
 0x272   :  { %762 = vmatmul.mubr.msk.f32.vlgmr.msra.gmra.mrb[4].mxu1 %vm48_vm2, %v443_v47 }
 0x345   :  { %v763_v48 = vpop.f32.mrb[4].mxu1 }
 0x346   :  { %v520_v49 = vpop.f32.mrb[5].mxu1 }
 0x347   :  { %531 = vrot.lane.b32.xlu1 %v520_v49, %s904_s6 }
 0x34b   :  { %533 = vrot.lane.b32.xlu1 %v763_v48, %s904_s6 }
 0x3b9   :  { %v532_v50 = vpop.permute.xlu1 %531 }
 0x3ba   :  { %v537_v51 = vadd.f32 %v532_v50, %v326_v30 }
 0x3bc   :  { %819 = vtanh.f32 %v537_v51 }
 0x3bd   :  { %v534_v52 = vpop.permute.xlu1 %533 }
 0x3be   :  { %v538_v53 = vadd.f32 %v534_v52, %v331_v28 }
 0x3c0   :  { %821 = vtanh.f32 %v538_v53 }
 0x3c6   :  { %v820_v60 = vpop.eup %819 }
 0x3c7   :  { %547 = vrot.lane.b32.xlu0 %v820_v60, %s904_s6 }
 0x3ca   :  { %v822_v61 = vpop.eup %821 }
 0x3cb   :  { %549 = vrot.lane.b32.xlu1 %v822_v61, %s904_s6 }
 0x439   :  { %v548_v63 = vpop.permute.xlu0 %547 }
 0x43a   :  { %v553_v1 = vmul.f32 %v548_v63, %v543_v62 }
 0x43c   :  { %v555_v2 = vadd.f32 %v553_v1, %v541_v0 }
 0x43d   :  { %v550_v4 = vpop.permute.xlu1 %549 }
 0x43e   :  { %557 = vst.msk [vmem:[#allocation2] sm:$0xff] %vm48_vm2, %v555_v2  ;;  %823 = vtanh.f32 %v555_v2  ;;  %v554_v6 = vmul.f32 %v550_v4, %v544_v3 }
 0x440   :  { %v556_v7 = vadd.f32 %v554_v6, %v542_v5 }
 0x442   :  { %558 = vst.msk [vmem:[#allocation2 + $0x8] sm:$0xff] %vm48_vm2, %v556_v7  ;;  %825 = vtanh.f32 %v556_v7 }
 0x448   :  { %v824_v8 = vpop.eup %823 }
 0x449   :  { %772 = vmatprep.mubr.msk.f32.mxu0 %vm48_vm2, %v824_v8 }
 0x44c   :  { %v826_v9 = vpop.eup %825 }
 0x44d   :  { %773 = vmatmul.mubr.msk.f32.vlgmr.msra.gmra.mrb[2].mxu0 %vm48_vm2, %v826_v9 }
 0x520   :  { %v774_v11 = vpop.f32.mrb[2].mxu0 }
 0x521   :  { %v651_v12 = vadd.f32 %v774_v11, %v702_v10  ;;  %v645_v14 = vpop.f32.mrb[3].mxu0 }
 0x522   :  { %v646_v15 = vadd.f32 %v702_v10, %v645_v14 }
 0x523   :  { %658 = vrot.lane.b32.xlu1 %v651_v12, %s905_s7 }
 0x524   :  { %656 = vrot.lane.b32.xlu0 %v646_v15, %s905_s7 }
 0x595   :  { %v659_v13 = vpop.permute.xlu1 %658 }
 0x596   :  { %v663_v16 = vsel %vm48_vm2, %v556_v7, %v659_v13  ;;  %v657_v17 = vpop.permute.xlu0 %656 }
 0x597   :  { %v666_v18 = vsel %vm664_vm4, %v663_v16, 0.0  ;;  %v662_v19 = vsel %vm48_vm2, %v555_v2, %v657_v17 }
 0x598   :  { %668 = vst [vmem:[#allocation9 + $0x8] sm:$0xff] %v666_v18  ;;  %v665_v20 = vsel %vm664_vm4, %v662_v19, 0.0 }
 0x599   :  { %667 = vst [vmem:[#allocation9] sm:$0xff] %v665_v20 }
 0x59a   :  { %882 = shalt.err (!%p879_p6)
}
 0x59b   :  { %s883_s13 = scalar_lea.hbm %s993_s2, 256 }
 0x59c   :  { %p884_p7 = scmp.ne.s32.totalorder %s993_s2, %s883_s13  ;;  %p887_p8 = scmp.lt.u32.totalorder %s883_s13, %s993_s2 }
 0x59e   :  { %p889_p9 = pnand %p887_p8, %p884_p7 }
 0x5a0   :  { %892 = shalt.err (!%p889_p9)
}
 0x5a1   :  { %680 = dma.vmem_to_hbm [thread:$0]  %s675_s9, 256, %s993_s2, [#allocation6], %s900_s19, %s900_s19, %s901_s20  }
 0x5a2   :  { %897 = dma.done.wait [#allocation6], 256  }
 0x5a3   :  { %898 = vsyncadd [#allocation6], 4294967040 }
 0x5a4   :  { %684 = vsyncpa [#allocation5], 1 }
 0x5a5   :  { %685 = vsyncpa [#allocation8], 1 }
 0x5a6   :  { %686 = vsyncpa [#allocation6], 1 }

</bundles_post_ra>
